<compile_context>
chip_gen: v5e
topology: v5e:2x2
jax: 0.10.0
libtpu: 0.0.40
codegen_flags: <defaults>
</compile_context>

<pallas_src>
import functools

import jax
import jax.numpy as jnp
from jax.experimental import pallas as pl
from jax.experimental.pallas import tpu as pltpu


# ----------------------------------------------------------------------------
# Kernel bodies
# ----------------------------------------------------------------------------
def _masked_sums(h_ref, m_ref, s_offset=0, *, ts=None, s_total=None,
                 ragged=False):
    """Masked sum over the sequence tile on the VPU.

    h_ref: (TB, TS, H) hidden tile, native dtype
    m_ref: (TB, TS)    mask tile,   native dtype
    Returns (sums (TB, H) f32, counts (TB, 1) f32).
    """
    h = h_ref[...].astype(jnp.float32)                    # (TB, TS, H)
    m = m_ref[...].astype(jnp.float32)                    # (TB, TS)
    if ragged:
        # The last sequence tile may read past S: zero invalid positions.
        # jnp.where selects, so any garbage/NaN read out of bounds is squashed.
        pos = s_offset + jax.lax.broadcasted_iota(jnp.int32, (1, ts), 1)
        valid = pos < s_total                              # (1, TS)
        m = jnp.where(valid, m, 0.0)
        contrib = jnp.where(valid[:, :, None], h * m[:, :, None], 0.0)
    else:
        contrib = h * m[:, :, None]                        # (TB, TS, H)
    sums = jnp.sum(contrib, axis=1)                        # (TB, H)
    cnt = jnp.sum(m, axis=1, keepdims=True)                # (TB, 1)
    return sums, cnt


def _finalize_rows(pooled, w_ref, b_ref, g_ref, be_ref, o_ref, *, eps):
    """dense1 + LayerNorm on the pooled (TB, H) rows; writes (TB, H)."""
    # Weight is pre-transposed in the wrapper (in x out): no in-kernel .T and
    # no materialized full-tile f32 upcast (f32 accumulation via
    # preferred_element_type).
    y = jnp.dot(pooled, w_ref[...], preferred_element_type=jnp.float32)
    y = y + b_ref[...].astype(jnp.float32)
    mean = jnp.mean(y, axis=-1, keepdims=True)
    var = jnp.mean(jnp.square(y - mean), axis=-1, keepdims=True)
    y = (y - mean) * jax.lax.rsqrt(var + eps)
    y = y * g_ref[...].astype(jnp.float32) + be_ref[...].astype(jnp.float32)
    o_ref[...] = y.astype(o_ref.dtype)


def _pool_kernel_multi(h_ref, m_ref, w_ref, b_ref, g_ref, be_ref, o_ref,
                       sum_acc, cnt_acc, *, ts, s_total, ragged, sqrt, eps):
    """Grid (batch_blocks, seq_blocks); seq is the (arbitrary) reduction axis."""
    s = pl.program_id(1)

    @pl.when(s == 0)
    def _init():
        sum_acc[...] = jnp.zeros_like(sum_acc)
        cnt_acc[...] = jnp.zeros_like(cnt_acc)

    sums, cnt = _masked_sums(h_ref, m_ref, s * ts, ts=ts, s_total=s_total,
                             ragged=ragged)
    sum_acc[...] += sums
    cnt_acc[...] += cnt

    @pl.when(s == pl.num_programs(1) - 1)
    def _finalize():
        div = cnt_acc[...]
        if sqrt:
            div = jnp.sqrt(div)
        # NOTE: an all-zero mask row divides by zero (inf/NaN), matching the
        # PyTorch module.
        pooled = sum_acc[...] / div
        _finalize_rows(pooled, w_ref, b_ref, g_ref, be_ref, o_ref, eps=eps)


def _pool_kernel_single(h_ref, m_ref, w_ref, b_ref, g_ref, be_ref, o_ref,
                        *, sqrt, eps):
    """Single S step (S <= TS): no accumulator scratch / phases needed."""
    sums, cnt = _masked_sums(h_ref, m_ref)
    div = jnp.sqrt(cnt) if sqrt else cnt
    pooled = sums / div
    _finalize_rows(pooled, w_ref, b_ref, g_ref, be_ref, o_ref, eps=eps)


# ----------------------------------------------------------------------------
# Wrapper
# ----------------------------------------------------------------------------
def _pick_batch_tile(B, target):
    """Largest divisor of B that is <= target (avoids ragged batch tiles)."""
    target = max(1, min(B, int(target)))
    for t in range(target, 0, -1):
        if B % t == 0:
            return t
    return 1


def mean_pooler_forward(hidden_states, mask, weight, bias, gamma, beta, *,
                        sqrt=True, layer_norm_eps=1e-12,
                        seq_tile=None, batch_tile=None):
    """Pallas implementation of MeanPooler.forward.

    hidden_states: (B, S, H)  (any float dtype; accumulation is f32)
    mask:          (B, S) or None
    weight:        (H, H)  Linear weight in PyTorch layout (out x in)
    bias/gamma/beta: (H,)
    Returns: (B, 1, H) float32
    """
    B, S, H = hidden_states.shape
    if mask is None:
        mask = jnp.ones((B, S), dtype=hidden_states.dtype)
    # (B,1,S)/(B,1,H) layout keeps the batch tile out of the (8,128)-aligned
    # last-two block dims, so TB is a free parameter; the unit dim is squeezed
    # out of the kernel refs via a None block dim.
    mask3 = mask.reshape(B, 1, S)

    itemsize = jnp.dtype(hidden_states.dtype).itemsize

    # ---- VMEM-capacity-aware tile budget -----------------------------------
    try:
        vmem_cap = int(pltpu.get_tpu_info().vmem_capacity_bytes)
    except Exception:
        vmem_cap = 64 * 1024 * 1024            # conservative (v7x-sized)
    if vmem_cap >= 96 * 1024 * 1024:           # v5e / v6e: 128 MiB VMEM
        tile_budget, vmem_limit = 12 << 20, 100 << 20
    else:                                      # v7x: 64 MiB VMEM
        tile_budget, vmem_limit = 5 << 20, 48 << 20
    # Leave room for the VMEM-resident weight (+ params, scratch, output).
    w_bytes = H * H * jnp.dtype(weight.dtype).itemsize
    tile_budget = max(1 << 20, min(tile_budget, max(1, vmem_limit - w_bytes) // 3))

    # ---- batch tile ---------------------------------------------------------
    # >= 2 parallel batch blocks when B >= 2 (v7x megacore), <= 64 rows per
    # finalize, small enough that a >= 128-row sequence tile still fits the
    # budget, and always a divisor of B (no ragged batch blocks / no padding).
    if batch_tile is None:
        target_tb = min(64, max(1, (B + 1) // 2))
        target_tb = max(1, min(target_tb,
                               tile_budget // max(1, 128 * H * itemsize)))
    else:
        target_tb = batch_tile
    TB = _pick_batch_tile(B, target_tb)
    num_b = B // TB

    # ---- sequence tile ------------------------------------------------------
    if seq_tile is not None:
        ts_cap = max(1, int(seq_tile))
    else:
        ts_cap = max(128, (tile_budget // max(1, TB * H * itemsize)) // 128 * 128)
    if S <= ts_cap:
        TS, num_s = S, 1
    else:
        TS = max(128, (ts_cap // 128) * 128)   # lane/sublane aligned
        num_s = pl.cdiv(S, TS)                 # ragged last tile handled in-kernel
    ragged = (num_s > 1) and (S % TS != 0)

    # Layout plumbing outside the kernel: pre-transposed Linear weight and
    # (1, H) parameter rows.
    w_t = jnp.transpose(weight)
    bias2 = bias.reshape(1, H)
    gamma2 = gamma.reshape(1, H)
    beta2 = beta.reshape(1, H)

    out_shape = jax.ShapeDtypeStruct((B, 1, H), jnp.float32)

    def build(resident_consts):
        if num_s == 1:
            grid = (num_b,)
            dims = ("parallel",)
            h_spec = pl.BlockSpec((TB, TS, H), lambda i: (i, 0, 0))
            m_spec = pl.BlockSpec((TB, None, TS), lambda i: (i, 0, 0))
            o_spec = pl.BlockSpec((TB, None, H), lambda i: (i, 0, 0))
            const_idx = lambda i: (0, 0)
            scratch = []
            kern = functools.partial(_pool_kernel_single,
                                     sqrt=sqrt, eps=layer_norm_eps)
        else:
            grid = (num_b, num_s)
            dims = ("parallel", "arbitrary")
            h_spec = pl.BlockSpec((TB, TS, H), lambda i, s: (i, s, 0))
            m_spec = pl.BlockSpec((TB, None, TS), lambda i, s: (i, 0, s))
            o_spec = pl.BlockSpec((TB, None, H), lambda i, s: (i, 0, 0))
            const_idx = lambda i, s: (0, 0)
            scratch = [pltpu.VMEM((TB, H), jnp.float32),
                       pltpu.VMEM((TB, 1), jnp.float32)]
            kern = functools.partial(_pool_kernel_multi, ts=TS, s_total=S,
                                     ragged=ragged, sqrt=sqrt,
                                     eps=layer_norm_eps)
        if resident_consts:
            # Whole-array, single-buffered VMEM residents (no double-buffering
            # of the weight / params).
            w_spec = pl.BlockSpec(memory_space=pltpu.MemorySpace.VMEM)
            p_spec = pl.BlockSpec(memory_space=pltpu.MemorySpace.VMEM)
        else:
            w_spec = pl.BlockSpec((H, H), const_idx)
            p_spec = pl.BlockSpec((1, H), const_idx)
        return pl.pallas_call(
            kern,
            out_shape=out_shape,
            grid_spec=pltpu.PrefetchScalarGridSpec(
                num_scalar_prefetch=0,
                grid=grid,
                in_specs=[h_spec, m_spec, w_spec, p_spec, p_spec, p_spec],
                out_specs=o_spec,
                scratch_shapes=scratch),
            compiler_params=pltpu.CompilerParams(
                dimension_semantics=dims,
                vmem_limit_bytes=vmem_limit),
        )

    args = (hidden_states, mask3, w_t, bias2, gamma2, beta2)
    try:
        return build(True)(*args)
    except Exception:
        # Fallback: constant-index-map blocked const specs (double-buffered).
        return build(False)(*args)


# ----------------------------------------------------------------------------
# Pure-JAX reference + self-test
# ----------------------------------------------------------------------------
def _reference_forward(hidden_states, mask, weight, bias, gamma, beta, *,
                       sqrt=True, eps=1e-12):
    if mask is None:
        mask = jnp.ones(hidden_states.shape[:2], dtype=hidden_states.dtype)
    h32 = hidden_states.astype(jnp.float32)
    m32 = mask.astype(jnp.float32)
    sums = jnp.einsum('bsh,bs->bh', h32, m32)[:, None, :]   # (B,1,H)
    div = jnp.sum(m32, axis=1).reshape(-1, 1, 1)
    if sqrt:
        div = jnp.sqrt(div)
    pooled = sums / div
    y = pooled @ weight.T.astype(jnp.float32) + bias.astype(jnp.float32)
    mean = jnp.mean(y, axis=-1, keepdims=True)
    var = jnp.mean((y - mean) ** 2, axis=-1, keepdims=True)
    return (y - mean) * jax.lax.rsqrt(var + eps) * gamma + beta


if __name__ == "__main__":
    def run_case(key, B, S, H, seq_tile=None, batch_tile=None, use_mask=True):
        k_h, k_m, k_w, k_b, k_g, k_be = jax.random.split(key, 6)

        hidden_states = jax.random.normal(k_h, (B, S, H), dtype=jnp.float32)
        if use_mask:
            mask = (jax.random.uniform(k_m, (B, S)) > 0.3).astype(jnp.float32)
            mask = mask.at[:, 0].set(1.0)      # keep >= 1 token per row
        else:
            mask = None

        bound = 1.0 / (H ** 0.5)
        weight = jax.random.uniform(k_w, (H, H), minval=-bound, maxval=bound,
                                    dtype=jnp.float32)
        bias = jax.random.uniform(k_b, (H,), minval=-bound, maxval=bound,
                                  dtype=jnp.float32)
        gamma = 1.0 + 0.01 * jax.random.normal(k_g, (H,), dtype=jnp.float32)
        beta = 0.01 * jax.random.normal(k_be, (H,), dtype=jnp.float32)

        out = mean_pooler_forward(hidden_states, mask, weight, bias, gamma,
                                  beta, sqrt=True, layer_norm_eps=1e-12,
                                  seq_tile=seq_tile, batch_tile=batch_tile)
        out = jax.block_until_ready(out)

        ref = _reference_forward(hidden_states, mask, weight, bias, gamma,
                                 beta, sqrt=True, eps=1e-12)
        assert out.shape == (B, 1, H), out.shape
        err = float(jnp.max(jnp.abs(out - ref)))
        assert err < 1e-4, (B, S, H, err)

    key = jax.random.PRNGKey(0)
    k1, k2, k3 = jax.random.split(key, 3)

    # Small shape implied by the module (batch=2, seq=8, hidden=32):
    # single-trip S path, two parallel batch blocks (TB=1).
    run_case(k1, B=2, S=8, H=32)

    # Multi-tile path: (batch, seq) grid with a ragged last sequence tile
    # handled in-kernel (no padding of hidden_states), divisor batch tile
    # (TB=3 for B=9), f32 accumulator + finalize logic.
    run_case(k2, B=9, S=300, H=128, seq_tile=128)

    # mask=None path + ragged last S tile with a single batch block.
    run_case(k3, B=4, S=136, H=64, seq_tile=128, batch_tile=4, use_mask=False)

    print("KERNEL_OK")
</pallas_src>

<mosaic_0001>
module attributes {stable_mosaic.version = 11 : i64} {
  func.func @_pool_kernel_single(%arg0: i32, %arg1: memref<1x8x32xf32, #tpu.memory_space<vmem>>, %arg2: memref<1x1x8xf32, #tpu.memory_space<vmem>>, %arg3: memref<32x32xf32, #tpu.memory_space<vmem>>, %arg4: memref<1x32xf32, #tpu.memory_space<vmem>>, %arg5: memref<1x32xf32, #tpu.memory_space<vmem>>, %arg6: memref<1x32xf32, #tpu.memory_space<vmem>>, %arg7: memref<1x1x32xf32, #tpu.memory_space<vmem>>) attributes {dimension_semantics = [#tpu.dimension_semantics<parallel>], iteration_bounds = array<i64: 2>, scalar_prefetch = 0 : i64, scratch_operands = 0 : i64, tpu.core_type = #tpu.core_type<tc>, window_params = [{transform_indices = @transform_0, window_bounds = array<i64: 1, 8, 32>}, {transform_indices = @transform_1, window_bounds = array<i64: 1, 1, 8>}, {pipeline_mode = #tpu.pipeline_mode<synchronous>, transform_indices = @transform_2, window_bounds = array<i64: 32, 32>}, {pipeline_mode = #tpu.pipeline_mode<synchronous>, transform_indices = @transform_3, window_bounds = array<i64: 1, 32>}, {pipeline_mode = #tpu.pipeline_mode<synchronous>, transform_indices = @transform_4, window_bounds = array<i64: 1, 32>}, {pipeline_mode = #tpu.pipeline_mode<synchronous>, transform_indices = @transform_5, window_bounds = array<i64: 1, 32>}, {transform_indices = @transform_6, window_bounds = array<i64: 1, 1, 32>}]} {
    %c0 = arith.constant 0 : index
    %c0_0 = arith.constant 0 : index
    %c0_1 = arith.constant 0 : index
    %0 = vector.load %arg1[%c0, %c0_0, %c0_1] : memref<1x8x32xf32, #tpu.memory_space<vmem>>, vector<1x8x32xf32>
    %c0_2 = arith.constant 0 : index
    %c0_3 = arith.constant 0 : index
    %c0_4 = arith.constant 0 : index
    %1 = vector.load %arg2[%c0_2, %c0_3, %c0_4] : memref<1x1x8xf32, #tpu.memory_space<vmem>>, vector<1x1x8xf32>
    %2 = vector.shape_cast %1 : vector<1x1x8xf32> to vector<1x8xf32>
    %3 = vector.shape_cast %2 : vector<1x8xf32> to vector<1x8x1xf32>
    %4 = vector.broadcast %3 : vector<1x8x1xf32> to vector<1x8x32xf32>
    %5 = arith.mulf %0, %4 : vector<1x8x32xf32>
    %cst = arith.constant dense<0.000000e+00> : vector<1x32xf32>
    %6 = vector.multi_reduction <add>, %5, %cst [1] : vector<1x8x32xf32> to vector<1x32xf32>
    %cst_5 = arith.constant dense<0.000000e+00> : vector<1xf32>
    %7 = vector.multi_reduction <add>, %2, %cst_5 [1] : vector<1x8xf32> to vector<1xf32>
    %8 = vector.shape_cast %7 : vector<1xf32> to vector<1x1xf32>
    %9 = math.sqrt %8 : vector<1x1xf32>
    %10 = vector.broadcast %9 : vector<1x1xf32> to vector<1x32xf32>
    %11 = arith.divf %6, %10 : vector<1x32xf32>
    %c0_6 = arith.constant 0 : index
    %c0_7 = arith.constant 0 : index
    %12 = vector.load %arg3[%c0_6, %c0_7] : memref<32x32xf32, #tpu.memory_space<vmem>>, vector<32x32xf32>
    %cst_8 = arith.constant dense<0.000000e+00> : vector<1x32xf32>
    %13 = tpu.matmul %11, %12, %cst_8 {dimension_numbers = #tpu.dot_dimension_numbers<[1], [0], [0], [1], [0, 0, 1, 1], [], []>} : vector<1x32xf32>, vector<32x32xf32>, vector<1x32xf32> -> vector<1x32xf32>
    %c0_9 = arith.constant 0 : index
    %c0_10 = arith.constant 0 : index
    %14 = vector.load %arg4[%c0_9, %c0_10] : memref<1x32xf32, #tpu.memory_space<vmem>>, vector<1x32xf32>
    %15 = arith.addf %13, %14 : vector<1x32xf32>
    %cst_11 = arith.constant dense<0.000000e+00> : vector<1xf32>
    %16 = vector.multi_reduction <add>, %15, %cst_11 [1] : vector<1x32xf32> to vector<1xf32>
    %17 = vector.shape_cast %16 : vector<1xf32> to vector<1x1xf32>
    %cst_12 = arith.constant 3.200000e+01 : f32
    %18 = vector.broadcast %cst_12 : f32 to vector<1x1xf32>
    %19 = arith.divf %17, %18 : vector<1x1xf32>
    %20 = vector.broadcast %19 : vector<1x1xf32> to vector<1x32xf32>
    %21 = arith.subf %15, %20 : vector<1x32xf32>
    %22 = arith.mulf %21, %21 : vector<1x32xf32>
    %cst_13 = arith.constant dense<0.000000e+00> : vector<1xf32>
    %23 = vector.multi_reduction <add>, %22, %cst_13 [1] : vector<1x32xf32> to vector<1xf32>
    %24 = vector.shape_cast %23 : vector<1xf32> to vector<1x1xf32>
    %cst_14 = arith.constant 3.200000e+01 : f32
    %25 = vector.broadcast %cst_14 : f32 to vector<1x1xf32>
    %26 = arith.divf %24, %25 : vector<1x1xf32>
    %27 = vector.broadcast %19 : vector<1x1xf32> to vector<1x32xf32>
    %28 = arith.subf %15, %27 : vector<1x32xf32>
    %cst_15 = arith.constant 9.99999996E-13 : f32
    %29 = vector.broadcast %cst_15 : f32 to vector<1x1xf32>
    %30 = arith.addf %26, %29 : vector<1x1xf32>
    %31 = math.rsqrt %30 : vector<1x1xf32>
    %32 = vector.broadcast %31 : vector<1x1xf32> to vector<1x32xf32>
    %33 = arith.mulf %28, %32 : vector<1x32xf32>
    %c0_16 = arith.constant 0 : index
    %c0_17 = arith.constant 0 : index
    %34 = vector.load %arg5[%c0_16, %c0_17] : memref<1x32xf32, #tpu.memory_space<vmem>>, vector<1x32xf32>
    %35 = arith.mulf %33, %34 : vector<1x32xf32>
    %c0_18 = arith.constant 0 : index
    %c0_19 = arith.constant 0 : index
    %36 = vector.load %arg6[%c0_18, %c0_19] : memref<1x32xf32, #tpu.memory_space<vmem>>, vector<1x32xf32>
    %37 = arith.addf %35, %36 : vector<1x32xf32>
    %c0_20 = arith.constant 0 : index
    %c0_21 = arith.constant 0 : index
    %c0_22 = arith.constant 0 : index
    %38 = vector.load %arg7[%c0_20, %c0_21, %c0_22] : memref<1x1x32xf32, #tpu.memory_space<vmem>>, vector<1x1x32xf32>
    %39 = vector.shape_cast %38 : vector<1x1x32xf32> to vector<1x32xf32>
    %40 = vector.shape_cast %37 : vector<1x32xf32> to vector<1x1x32xf32>
    tpu.vector_store %arg7[%c0_20, %c0_21, %c0_22], %40 {strides = array<i32>} : memref<1x1x32xf32, #tpu.memory_space<vmem>>, vector<1x1x32xf32>,
    return
  }
  func.func @transform_0(%arg0: i32) -> (i32, i32, i32) {
    %c0_i32 = arith.constant 0 : i32
    %c0_i32_0 = arith.constant 0 : i32
    %c0_i32_1 = arith.constant 0 : i32
    return %arg0, %c0_i32, %c0_i32_0 : i32, i32, i32
  }
  func.func @transform_1(%arg0: i32) -> (i32, i32, i32) {
    %c0_i32 = arith.constant 0 : i32
    %c0_i32_0 = arith.constant 0 : i32
    %c0_i32_1 = arith.constant 0 : i32
    return %arg0, %c0_i32, %c0_i32_0 : i32, i32, i32
  }
  func.func @transform_2(%arg0: i32) -> (i32, i32) {
    %c0_i32 = arith.constant 0 : i32
    %c0_i32_0 = arith.constant 0 : i32
    %c0_i32_1 = arith.constant 0 : i32
    return %c0_i32, %c0_i32_0 : i32, i32
  }
  func.func @transform_3(%arg0: i32) -> (i32, i32) {
    %c0_i32 = arith.constant 0 : i32
    %c0_i32_0 = arith.constant 0 : i32
    %c0_i32_1 = arith.constant 0 : i32
    return %c0_i32, %c0_i32_0 : i32, i32
  }
  func.func @transform_4(%arg0: i32) -> (i32, i32) {
    %c0_i32 = arith.constant 0 : i32
    %c0_i32_0 = arith.constant 0 : i32
    %c0_i32_1 = arith.constant 0 : i32
    return %c0_i32, %c0_i32_0 : i32, i32
  }
  func.func @transform_5(%arg0: i32) -> (i32, i32) {
    %c0_i32 = arith.constant 0 : i32
    %c0_i32_0 = arith.constant 0 : i32
    %c0_i32_1 = arith.constant 0 : i32
    return %c0_i32, %c0_i32_0 : i32, i32
  }
  func.func @transform_6(%arg0: i32) -> (i32, i32, i32) {
    %c0_i32 = arith.constant 0 : i32
    %c0_i32_0 = arith.constant 0 : i32
    %c0_i32_1 = arith.constant 0 : i32
    return %arg0, %c0_i32, %c0_i32_0 : i32, i32, i32
  }
}

module attributes {stable_mosaic.version = 11 : i64} {
  func.func @_pool_kernel_single(%arg0: i32, %arg1: memref<1x8x32xf32, #tpu.memory_space<vmem>>, %arg2: memref<1x1x8xf32, #tpu.memory_space<vmem>>, %arg3: memref<32x32xf32, #tpu.memory_space<vmem>>, %arg4: memref<1x32xf32, #tpu.memory_space<vmem>>, %arg5: memref<1x32xf32, #tpu.memory_space<vmem>>, %arg6: memref<1x32xf32, #tpu.memory_space<vmem>>, %arg7: memref<1x1x32xf32, #tpu.memory_space<vmem>>) attributes {dimension_semantics = [#tpu.dimension_semantics<parallel>], iteration_bounds = array<i64: 2>, scalar_prefetch = 0 : i64, scratch_operands = 0 : i64, tpu.core_type = #tpu.core_type<tc>, window_params = [{transform_indices = @transform_0, window_bounds = array<i64: 1, 8, 32>}, {transform_indices = @transform_1, window_bounds = array<i64: 1, 1, 8>}, {pipeline_mode = #tpu.pipeline_mode<synchronous>, transform_indices = @transform_2, window_bounds = array<i64: 32, 32>}, {pipeline_mode = #tpu.pipeline_mode<synchronous>, transform_indices = @transform_3, window_bounds = array<i64: 1, 32>}, {pipeline_mode = #tpu.pipeline_mode<synchronous>, transform_indices = @transform_4, window_bounds = array<i64: 1, 32>}, {pipeline_mode = #tpu.pipeline_mode<synchronous>, transform_indices = @transform_5, window_bounds = array<i64: 1, 32>}, {transform_indices = @transform_6, window_bounds = array<i64: 1, 1, 32>}]} {
    %c0 = arith.constant 0 : index
    %c0_0 = arith.constant 0 : index
    %c0_1 = arith.constant 0 : index
    %0 = vector.load %arg1[%c0, %c0_0, %c0_1] : memref<1x8x32xf32, #tpu.memory_space<vmem>>, vector<1x8x32xf32>
    %c0_2 = arith.constant 0 : index
    %c0_3 = arith.constant 0 : index
    %c0_4 = arith.constant 0 : index
    %1 = vector.load %arg2[%c0_2, %c0_3, %c0_4] : memref<1x1x8xf32, #tpu.memory_space<vmem>>, vector<1x1x8xf32>
    %2 = vector.shape_cast %1 : vector<1x1x8xf32> to vector<1x8xf32>
    %3 = vector.shape_cast %2 : vector<1x8xf32> to vector<1x8x1xf32>
    %4 = vector.broadcast %3 : vector<1x8x1xf32> to vector<1x8x32xf32>
    %5 = arith.mulf %0, %4 : vector<1x8x32xf32>
    %cst = arith.constant dense<0.000000e+00> : vector<1x32xf32>
    %6 = vector.multi_reduction <add>, %5, %cst [1] : vector<1x8x32xf32> to vector<1x32xf32>
    %cst_5 = arith.constant dense<0.000000e+00> : vector<1xf32>
    %7 = vector.multi_reduction <add>, %2, %cst_5 [1] : vector<1x8xf32> to vector<1xf32>
    %8 = vector.shape_cast %7 : vector<1xf32> to vector<1x1xf32>
    %9 = math.sqrt %8 : vector<1x1xf32>
    %10 = vector.broadcast %9 : vector<1x1xf32> to vector<1x32xf32>
    %11 = arith.divf %6, %10 : vector<1x32xf32>
    %c0_6 = arith.constant 0 : index
    %c0_7 = arith.constant 0 : index
    %12 = vector.load %arg3[%c0_6, %c0_7] : memref<32x32xf32, #tpu.memory_space<vmem>>, vector<32x32xf32>
    %cst_8 = arith.constant dense<0.000000e+00> : vector<1x32xf32>
    %13 = tpu.matmul %11, %12, %cst_8 {dimension_numbers = #tpu.dot_dimension_numbers<[1], [0], [0], [1], [0, 0, 1, 1], [], []>} : vector<1x32xf32>, vector<32x32xf32>, vector<1x32xf32> -> vector<1x32xf32>
    %c0_9 = arith.constant 0 : index
    %c0_10 = arith.constant 0 : index
    %14 = vector.load %arg4[%c0_9, %c0_10] : memref<1x32xf32, #tpu.memory_space<vmem>>, vector<1x32xf32>
    %15 = arith.addf %13, %14 : vector<1x32xf32>
    %cst_11 = arith.constant dense<0.000000e+00> : vector<1xf32>
    %16 = vector.multi_reduction <add>, %15, %cst_11 [1] : vector<1x32xf32> to vector<1xf32>
    %17 = vector.shape_cast %16 : vector<1xf32> to vector<1x1xf32>
    %cst_12 = arith.constant 3.200000e+01 : f32
    %18 = vector.broadcast %cst_12 : f32 to vector<1x1xf32>
    %19 = arith.divf %17, %18 : vector<1x1xf32>
    %20 = vector.broadcast %19 : vector<1x1xf32> to vector<1x32xf32>
    %21 = arith.subf %15, %20 : vector<1x32xf32>
    %22 = arith.mulf %21, %21 : vector<1x32xf32>
    %cst_13 = arith.constant dense<0.000000e+00> : vector<1xf32>
    %23 = vector.multi_reduction <add>, %22, %cst_13 [1] : vector<1x32xf32> to vector<1xf32>
    %24 = vector.shape_cast %23 : vector<1xf32> to vector<1x1xf32>
    %cst_14 = arith.constant 3.200000e+01 : f32
    %25 = vector.broadcast %cst_14 : f32 to vector<1x1xf32>
    %26 = arith.divf %24, %25 : vector<1x1xf32>
    %27 = vector.broadcast %19 : vector<1x1xf32> to vector<1x32xf32>
    %28 = arith.subf %15, %27 : vector<1x32xf32>
    %cst_15 = arith.constant 9.99999996E-13 : f32
    %29 = vector.broadcast %cst_15 : f32 to vector<1x1xf32>
    %30 = arith.addf %26, %29 : vector<1x1xf32>
    %31 = math.rsqrt %30 : vector<1x1xf32>
    %32 = vector.broadcast %31 : vector<1x1xf32> to vector<1x32xf32>
    %33 = arith.mulf %28, %32 : vector<1x32xf32>
    %c0_16 = arith.constant 0 : index
    %c0_17 = arith.constant 0 : index
    %34 = vector.load %arg5[%c0_16, %c0_17] : memref<1x32xf32, #tpu.memory_space<vmem>>, vector<1x32xf32>
    %35 = arith.mulf %33, %34 : vector<1x32xf32>
    %c0_18 = arith.constant 0 : index
    %c0_19 = arith.constant 0 : index
    %36 = vector.load %arg6[%c0_18, %c0_19] : memref<1x32xf32, #tpu.memory_space<vmem>>, vector<1x32xf32>
    %37 = arith.addf %35, %36 : vector<1x32xf32>
    %c0_20 = arith.constant 0 : index
    %c0_21 = arith.constant 0 : index
    %c0_22 = arith.constant 0 : index
    %38 = vector.load %arg7[%c0_20, %c0_21, %c0_22] : memref<1x1x32xf32, #tpu.memory_space<vmem>>, vector<1x1x32xf32>
    %39 = vector.shape_cast %38 : vector<1x1x32xf32> to vector<1x32xf32>
    %40 = vector.shape_cast %37 : vector<1x32xf32> to vector<1x1x32xf32>
    tpu.vector_store %arg7[%c0_20, %c0_21, %c0_22], %40 {strides = array<i32>} : memref<1x1x32xf32, #tpu.memory_space<vmem>>, vector<1x1x32xf32>,
    return
  }
  func.func @transform_0(%arg0: i32) -> (i32, i32, i32) {
    %c0_i32 = arith.constant 0 : i32
    %c0_i32_0 = arith.constant 0 : i32
    %c0_i32_1 = arith.constant 0 : i32
    return %arg0, %c0_i32, %c0_i32_0 : i32, i32, i32
  }
  func.func @transform_1(%arg0: i32) -> (i32, i32, i32) {
    %c0_i32 = arith.constant 0 : i32
    %c0_i32_0 = arith.constant 0 : i32
    %c0_i32_1 = arith.constant 0 : i32
    return %arg0, %c0_i32, %c0_i32_0 : i32, i32, i32
  }
  func.func @transform_2(%arg0: i32) -> (i32, i32) {
    %c0_i32 = arith.constant 0 : i32
    %c0_i32_0 = arith.constant 0 : i32
    %c0_i32_1 = arith.constant 0 : i32
    return %c0_i32, %c0_i32_0 : i32, i32
  }
  func.func @transform_3(%arg0: i32) -> (i32, i32) {
    %c0_i32 = arith.constant 0 : i32
    %c0_i32_0 = arith.constant 0 : i32
    %c0_i32_1 = arith.constant 0 : i32
    return %c0_i32, %c0_i32_0 : i32, i32
  }
  func.func @transform_4(%arg0: i32) -> (i32, i32) {
    %c0_i32 = arith.constant 0 : i32
    %c0_i32_0 = arith.constant 0 : i32
    %c0_i32_1 = arith.constant 0 : i32
    return %c0_i32, %c0_i32_0 : i32, i32
  }
  func.func @transform_5(%arg0: i32) -> (i32, i32) {
    %c0_i32 = arith.constant 0 : i32
    %c0_i32_0 = arith.constant 0 : i32
    %c0_i32_1 = arith.constant 0 : i32
    return %c0_i32, %c0_i32_0 : i32, i32
  }
  func.func @transform_6(%arg0: i32) -> (i32, i32, i32) {
    %c0_i32 = arith.constant 0 : i32
    %c0_i32_0 = arith.constant 0 : i32
    %c0_i32_1 = arith.constant 0 : i32
    return %arg0, %c0_i32, %c0_i32_0 : i32, i32, i32
  }
}

</mosaic_0001>

<bundles_post_ra>
// kernel: tpu_custom_call.1
= control target key start
LH: loop header
LB: loop body
LE: loop exit
PB: predicated region body
PF: predicated region fallthrough
CT: control target
= control target key end

     0   :  { %s1020_s0 = inlined_call_operand.hbm [shape: f32[2,8,32], index: 0, kind: input, shape index: {}]   ;;  %s1021_s1 = inlined_call_operand.hbm [shape: f32[2,1,8], index: 1, kind: input, shape index: {}]   ;;  %s1022_s2 = inlined_call_operand.hbm [shape: f32[32,32], index: 2, kind: input, shape index: {}]   ;;  %s1023_s3 = inlined_call_operand.vmem [shape: f32[1,32], index: 3, kind: input, shape index: {}]   ;;  %s1024_s4 = inlined_call_operand.vmem [shape: f32[1,32], index: 4, kind: input, shape index: {}]   ;;  %s1025_s5 = inlined_call_operand.vmem [shape: f32[1,32], index: 5, kind: input, shape index: {}]   ;;  %s1026_s6 = inlined_call_operand.hbm [shape: f32[2,1,32], index: 6, kind: output, shape index: {}]  }
   0x1   :  { %1031 = sst [smem:[#allocation17_spill]] %s1022_s2 }
   0x2   :  { %11 = vsyncpa [#allocation3], 0 }
   0x3   :  { %13 = vsyncpa [#allocation3 + $0x1], 0 }
   0x4   :  { %14 = vsyncpa [#allocation6], 0 }
   0x5   :  { %16 = vsyncpa [#allocation6 + $0x1], 0 }
   0x6   :  { %17 = vsyncpa [#allocation4], 0 }
   0x7   :  { %19 = vsyncpa [#allocation4 + $0x1], 0  ;;  %s830_s21 = smov 0   ;;  %s832_s22 = smov 0  }
   0x8   :  { %s834_s23 = smov 0   ;;  %s836_s24 = smov 0  }
   0x9 LB: > { %1032 = sst [smem:[#allocation13_spill]] %s785_s23  ;;  %s854_s28 = sadd.s32 4294967295, %s789_s24   ;;  %s789_s24 = sphi %s836_s24, %s1045_s24   ;;  %s785_s23 = sphi %s834_s23, %s1047_s23   ;;  %s781_s22 = sphi %s832_s22, %s1049_s22   ;;  %s777_s21 = sphi %s830_s21, %s1048_s21  }
   0xa   : > { %1033 = sst [smem:[#allocation14_spill]] %s789_s24  ;;  %p539_p0 = scmp.ge.s32.totalorder %s789_s24, 1 }
   0xb   : > { %s1034_s2 = sld [smem:[#allocation17_spill]]  ;;  %p46_p1 = scmp.eq.s32.totalorder %s854_s28, 0 }
   0xc   : > { %p192_p2 = scmp.lt.s32.totalorder %s789_s24, 3  ;;  %s791_s30 = smov [#allocation7]  }
   0xd   : > { %s205_s7 = sshll.u32 %s791_s30, 4  ;;  %s792_s8 = smov 128   ;;  %s206_s7 = int_to_ptr.vmem [resolvable:$true] %s205_s7 }
   0xe   : > { %p859_p3 = pnand %p539_p0, %p192_p2  ;;  %s793_s9 = smov 8  }
   0xf   : > { %s538_s10 = sadd.s32 4294967294, %s789_s24   ;;  %s870_s11 = sadd.s32 1, %s789_s24  }
  0x10   : > { %p560_p4 = pneg %p859_p3  ;;  %1036 = sst [smem:[#allocation15_spill]] %s870_s11 }
  0x11   : > { %s203_s27 = sshll.u32 %s1034_s2, 4  ;;  %s32_s12 = sadd.s32 1, %s785_s23  ;;  %s204_s27 = int_to_ptr.hbm [resolvable:$true] %s203_s27 }
  0x12   : > { %p561_p6 = pnand %p560_p4, %p46_p1  ;;  %s29_s13 = ssub.s32 %s789_s24, %s870_s11 }
  0x13   : > { %p39_p7 = scmp.ne.s32.totalorder %s785_s23, %s781_s22  ;;  %p30_p8 = scmp.eq.s32.totalorder %s29_s13, 0 }
  0x14   : > { %563 = dma.hbm_to_vmem [thread:$0]  (!%p561_p6), %s204_s27, 512, %s206_s7, [#allocation6], %s792_s8, %s792_s8, %s793_s9  }
  0x15   : > { %p40_p9 = scmp.eq.s32.totalorder %s789_s24, 0  ;;  %p45_p10 = scmp.ne.s32.totalorder %s781_s22, %s777_s21 }
  0x16   : > { %p179_p11 = scmp.eq.s32.totalorder %s854_s28, 1  ;;  %p185_p2 = scmp.eq.s32.totalorder %s538_s10, 1 }
  0x17   : > { %s882_s14 = scalar_select %p30_p8, %s785_s23, %s32_s12  }
  0x18   : > { %p884_p12 = por %p40_p9, %p39_p7  ;;  %p890_p13 = por %p46_p1, %p45_p10 }
  0x19   : > { %1037 = sst [smem:[#allocation16_spill]] %s882_s14  ;;  %p894_p0 = por %p179_p11, %p39_p7 }
  0x1a   : > { %p576_p4 = scmp.lt.s32.totalorder %s789_s24, 2  ;;  %s900_s18 = sand.u32 1, %s785_s23  }
  0x1b   : > { %p902_p6 = por %p185_p2, %p45_p10  ;;  %s542_s20 = sshll.u32 %s900_s18, 3 }
  0x1c   : > { %s543_s25 = sshll.u32 %s789_s24, 3  ;;  %s232_s8 = scalar_lea.vmem [#allocation2], %s542_s20 }
  0x1d   : > { %s236_s30 = scalar_lea.hbm %s1020_s0, %s543_s25  ;;  %s240_s9 = sshll.u32 %s232_s8, 4  ;;  %s241_s9 = int_to_ptr.vmem [resolvable:$true] %s240_s9 }
  0x1e   : > { %s238_s7 = sshll.u32 %s236_s30, 4  ;;  %p913_p7 = pnand %p576_p4, %p884_p12  ;;  %s239_s7 = int_to_ptr.hbm [resolvable:$true] %s238_s7 }
  0x1f   : > { %s247_s12 = sand.u32 1, %s789_s24   ;;  %s253_s14 = scalar_lea.hbm %s1021_s1, %s789_s24 }
  0x20   : > { %s229_s23 = scalar_lea.sflag [#allocation3], %s900_s18  ;;  %s655_s26 = sshra.s32 %s239_s7, 4  ;;  %s656_s26 = int_to_ptr.hbm [resolvable:$true] %s655_s26 }
  0x21   : > { %s657_s25 = scalar_lea.hbm %s656_s26, 8  ;;  %p659_p9 = pneg %p913_p7 }
  0x22   : > { %p658_p8 = scmp.ne.s32.totalorder %s656_s26, %s657_s25  ;;  %s662_s27 = scalar_lea.hbm %s1020_s0, 16 }
  0x23   : > { %p663_p12 = scmp.lt.s32.totalorder %s656_s26, %s1020_s0  ;;  %p664_p2 = scmp.lt.s32.totalorder %s662_s27, %s657_s25 }
  0x24   : > { %p660_p10 = pnand %p659_p9, %p658_p8 }
  0x25   : > { %p665_p4 = por %p664_p2, %p663_p12 }
  0x26   : > { %p661_p11 = pneg %p660_p10 }
  0x28   : > { %p666_p5 = pnand %p665_p4, %p661_p11 }
  0x2a   : > { %669 = shalt.err (!%p666_p5)
}
  0x2b   : > { %567 = dma.hbm_to_vmem [thread:$0]  (!%p913_p7), %s239_s7, 128, %s241_s9, %s229_s23  }
  0x2c   : > { %s255_s2 = sshll.u32 %s253_s14, 4  ;;  %s250_s13 = scalar_lea.vmem [#allocation5], %s900_s18  ;;  %s256_s2 = int_to_ptr.hbm [resolvable:$true] %s255_s2 }
  0x2d   : > { %s257_s11 = sshll.u32 %s250_s13, 4  ;;  %s248_s15 = scalar_lea.sflag [#allocation6], %s247_s12  ;;  %s258_s11 = int_to_ptr.vmem [resolvable:$true] %s257_s11 }
  0x2e   : > { %s685_s20 = sshra.s32 %s256_s2, 4  ;;  %s692_s27 = scalar_lea.hbm %s1021_s1, 2  ;;  %s686_s20 = int_to_ptr.hbm [resolvable:$true] %s685_s20 }
  0x2f   : > { %s687_s24 = scalar_lea.hbm %s686_s20, 1  ;;  %p693_p5 = scmp.lt.s32.totalorder %s686_s20, %s1021_s1 }
  0x30   : > { %p688_p8 = scmp.ne.s32.totalorder %s686_s20, %s687_s24  ;;  %p694_p12 = scmp.lt.s32.totalorder %s692_s27, %s687_s24 }
  0x32   : > { %p690_p10 = pnand %p688_p8, %p659_p9  ;;  %p695_p2 = por %p694_p12, %p693_p5 }
  0x34   : > { %p691_p11 = pneg %p690_p10 }
  0x36   : > { %p696_p4 = pnand %p695_p2, %p691_p11 }
  0x38   : > { %699 = shalt.err (!%p696_p4)
}
  0x39   : > { %570 = dma.hbm_to_vmem [thread:$0]  (!%p913_p7), %s256_s2, 16, %s258_s11, %s248_s15  }
  0x3a   : > { %266 = sbr.rel (%p859_p3) target bundleno = 626 (0x272), region = 44  ;;  %s951_s14 = sand.u32 (!%p859_p3), 1, %s781_s22  }
  0x3b   : > { %s545_s18 = sshll.u32 (!%p859_p3), %s951_s14, 3  ;;  %s269_s7 = scalar_lea.sflag (!%p859_p3), [#allocation3], %s951_s14 }
  0x3c   : > { %s955_s9 = scalar_lea.vmem (!%p859_p3), [#allocation2], %s545_s18 }
  0x3f   : > { %760 = dma.done.wait (%p890_p13), %s269_s7, 128  }
  0x40   : > { %762 = vsyncadd (%p890_p13), %s269_s7, 4294967168  ;;  %s278_s24 = sand.u32 1, %s854_s28   ;;  %s281_s11 = scalar_lea.vmem [#allocation5], %s951_s14 }
  0x41   : > { %s279_s29 = scalar_lea.sflag [#allocation6], %s278_s24 }
  0x42   : > { %764 = dma.done.wait (%p890_p13), %s279_s29, 16  }
  0x43   : > { %766 = vsyncadd (%p890_p13), %s279_s29, 4294967280 }
  0x44   : > { %768 = dma.done.wait (%p46_p1), [#allocation6], 512  }
  0x45   : > { %770 = vsyncadd (%p46_p1), [#allocation6], 4294966784  ;;  %v322_v0 = vlaneseq  ;;  %vm337_vm0 = vcmask 57344   ;;  %v320_v2 = vld [vmem:[%s281_s11] sm:$0x1]  ;;  %v371_v5 = vld [vmem:[#allocation7 + $0x18] sm:$0xff]  ;;  %s440_s2 = scalar_lea.hbm %s1026_s6, %s854_s28 }
  0x46   : > { %v338_v3 = vsel %vm337_vm0, %v320_v2, 0.0  ;;  %v616_v4 = vld [vmem:[%s281_s11] ss:$0 sm:$0xff]  ;;  %v370_v6 = vld [vmem:[#allocation7 + $0x10] sm:$0xff]  ;;  %388 = vmatpush.msra.mxu0 %v371_v5  ;;  %v368_v8 = vld [vmem:[#allocation7] sm:$0xff]  ;;  %vm329_vm2 = vcmask 261120  }
  0x47   : > { %v323_v1 = vshrl.u32 %v322_v0, 7  ;;  %339 = vadd.xlane.f32.xlu0 %v338_v3  ;;  %v369_v7 = vld [vmem:[#allocation7 + $0x8] sm:$0xff]  ;;  %vm396_vm8 = vcmask 253952   ;;  %v794_v45 = vmov 32.0   ;;  %s318_s25 = scalar_lea.vmem [#allocation8], %s951_s14  ;;  %s444_s30 = sshll.u32 %s440_s2, 4  ;;  %s445_s30 = int_to_ptr.hbm [resolvable:$true] %s444_s30 }
  0x48   : > { %389 = vmatpush.msra.mxu0 %v370_v6  ;;  %v319_v16 = vld [vmem:[%s955_s9] sm:$0xff]  ;;  %s442_s27 = sshll.u32 %s318_s25, 4  ;;  %s432_s28 = scalar_lea.sflag [#allocation4], %s951_s14  ;;  %s443_s27 = int_to_ptr.vmem [resolvable:$true] %s442_s27 }
  0x49   : > { %615 = vset.pattern.permute.xlu0 %v323_v1  ;;  %v372_v41 = vld [vmem:[%s1023_s3] sm:$0x1]  ;;  %s729_s23 = sshra.s32 %s445_s30, 4  ;;  %s735_s24 = scalar_lea.hbm %s1026_s6, 2  ;;  %s730_s23 = int_to_ptr.hbm [resolvable:$true] %s729_s23 }
  0x4a   : > { %390 = vmatpush.msra.mxu0 %v369_v7  ;;  %v426_v2 = vld [vmem:[%s1024_s4] sm:$0x1]  ;;  %s731_s18 = scalar_lea.hbm %s730_s23, 1  ;;  %p736_p7 = scmp.lt.s32.totalorder %s730_s23, %s1026_s6 }
  0x4b   : > { %v428_v5 = vld [vmem:[%s1025_s5] sm:$0x1]  ;;  %p732_p1 = scmp.ne.s32.totalorder %s730_s23, %s731_s18  ;;  %p737_p9 = scmp.lt.s32.totalorder %s735_s24, %s731_s18 }
  0x4c   : > { %391 = vmatpush.msra.mxu0 %v368_v8 }
  0x4d   : > { %p733_p3 = pnand %p732_p1, %p894_p0  ;;  %p738_p8 = por %p737_p9, %p736_p7 }
  0x4f   : > { %p734_p13 = pneg %p733_p3 }
  0x51   : > { %p739_p10 = pnand %p738_p8, %p734_p13 }
  0x5b   : > { %326 = vperm.xlu0 %615, %v616_v4  }
  0xba   : > { %v340_v9 = vpop.xlane.xlu0 %339 }
  0xbb   : > { %617 = vrsqrt.f32 %v340_v9  ;;  %vm348_vm1 = vcmp.eq.f32.partialorder %v340_v9, inf  ;;  %v351_v18 = vand.u32 2147483648, %v340_v9  ;;  %vm350_vm3 = vcmp.eq.f32.partialorder %v340_v9, 0.0 }
  0xc1   : > { %v618_v10 = vpop.eup %617 }
  0xc2   : > { %v342_v11 = vmul.f32 %v618_v10, %v340_v9 }
  0xc4   : > { %v343_v12 = vmul.f32 %v618_v10, %v342_v11 }
  0xc6   : > { %v344_v13 = vmul.f32 0.5, %v343_v12 }
  0xc8   : > { %v345_v14 = vsub.f32 1.5, %v344_v13 }
  0xca   : > { %v346_v15 = vmul.f32 %v618_v10, %v345_v14 }
  0xcc   : > { %v347_v17 = vmul.f32 %v346_v15, %v340_v9 }
  0xcd   : > { %v327_v19 = vpop.permute.xlu0 %326 }
  0xce   : > { %v349_v20 = vsel %vm348_vm1, %v340_v9, %v347_v17  ;;  %v328_v21 = vmul.f32 %v327_v19, %v319_v16 }
  0xcf   : > { %v352_v22 = vsel %vm350_vm3, %v351_v18, %v349_v20 }
  0xd0   : > { %v330_v23 = vsel %vm329_vm2, %v328_v21, 0.0  ;;  %619 = vrcp.f32 %v352_v22  ;;  %v364_v31 = vand.u32 2147483648, %v352_v22  ;;  %v362_v34 = vand.u32 2147483647, %v352_v22 }
  0xd1   : > { %v331_v24 = vrot.slane %v330_v23, 4  ;;  %vm358_vm5 = vweird.f32 %v352_v22  ;;  %621 = vrcp.f32 %v794_v45 }
  0xd2   : > { %v365_v36 = vor.u32 1.1754944e-38, %v364_v31  ;;  %vm363_vm7 = vcmp.eq.f32.partialorder %v362_v34, 8.507059e+37 }
  0xd3   : > { %v332_v25 = vadd.f32 %v331_v24, %v330_v23 }
  0xd5   : > { %v333_v26 = vrot.slane %v332_v25, 2 }
  0xd6   : > { %v620_v27 = vpop.eup %619 }
  0xd7   : > { %v334_v28 = vadd.f32 %v333_v26, %v332_v25  ;;  %v354_v29 = vmul.f32 %v620_v27, %v352_v22  ;;  %vm359_vm4 = vweird.f32 %v620_v27  ;;  %v622_v46 = vpop.eup %621 }
  0xd8   : > { %vm360_vm6 = vmor %vm358_vm5, %vm359_vm4  ;;  %v401_v47 = vmul.f32 32.0, %v622_v46  ;;  %vm405_vm9 = vweird.f32 %v622_v46 }
  0xd9   : > { %v355_v30 = vsub.f32 1.0, %v354_v29  ;;  %v335_v32 = vrot.slane %v334_v28, 1 }
  0xda   : > { %v402_v48 = vsub.f32 1.0, %v401_v47 }
  0xdb   : > { %v356_v33 = vmul.f32 %v620_v27, %v355_v30  ;;  %v336_v37 = vadd.f32 %v335_v32, %v334_v28 }
  0xdc   : > { %v403_v49 = vmul.f32 %v622_v46, %v402_v48 }
  0xdd   : > { %v357_v35 = vadd.f32 %v620_v27, %v356_v33 }
  0xde   : > { %v404_v50 = vadd.f32 %v622_v46, %v403_v49 }
  0xdf   : > { %v361_v38 = vsel %vm360_vm6, %v620_v27, %v357_v35 }
  0xe0   : > { %v366_v39 = vsel %vm363_vm7, %v365_v36, %v361_v38  ;;  %v406_v51 = vsel %vm405_vm9, %v622_v46, %v404_v50 }
  0xe1   : > { %v367_v40 = vmul.f32 %v366_v39, %v336_v37 }
  0xe3   : > { %547 = vmatmul.msk.f32.vlgmr.msra.gmra.mxu0 %vm329_vm2, %v367_v40 }
 0x160   : > { %v393_v42 = vpop.f32.mrf.mxu0 }
 0x161   : > { %v394_v43 = vadd.f32 %v393_v42, %v372_v41 }
 0x163   : > { %v397_v44 = vsel %vm396_vm8, %v394_v43, 0.0 }
 0x164   : > { %398 = vadd.xlane.f32.xlu1 %v397_v44 }
 0x1d7   : > { %v399_v52 = vpop.xlane.xlu1 %398 }
 0x1d8   : > { %v407_v53 = vmul.f32 %v406_v51, %v399_v52 }
 0x1da   : > { %v408_v54 = vsub.f32 %v394_v43, %v407_v53 }
 0x1dc   : > { %v409_v55 = vmul.f32 %v408_v54, %v408_v54 }
 0x1de   : > { %v410_v56 = vsel %vm396_vm8, %v409_v55, 0.0 }
 0x1df   : > { %411 = vadd.xlane.f32.xlu1 %v410_v56 }
 0x252   : > { %v412_v57 = vpop.xlane.xlu1 %411 }
 0x253   : > { %v413_v58 = vmul.f32 %v412_v57, %v406_v51 }
 0x255   : > { %v414_v59 = vadd.f32 1e-12, %v413_v58 }
 0x257   : > { %623 = vrsqrt.f32 %v414_v59  ;;  %vm421_vm11 = vweird.f32 %v414_v59 }
 0x25d   : > { %v624_v60 = vpop.eup %623 }
 0x25e   : > { %v416_v61 = vmul.f32 %v624_v60, %v414_v59  ;;  %vm422_vm10 = vweird.f32 %v624_v60 }
 0x25f   : > { %vm423_vm12 = vmor %vm421_vm11, %vm422_vm10 }
 0x260   : > { %v417_v62 = vmul.f32 %v624_v60, %v416_v61 }
 0x262   : > { %v418_v63 = vmul.f32 0.5, %v417_v62 }
 0x264   : > { %v419_v0 = vsub.f32 1.5, %v418_v63 }
 0x266   : > { %v420_v1 = vmul.f32 %v624_v60, %v419_v0 }
 0x268   : > { %v424_v3 = vsel %vm423_vm12, %v624_v60, %v420_v1 }
 0x269   : > { %v425_v4 = vmul.f32 %v424_v3, %v408_v54 }
 0x26b   : > { %v427_v6 = vmul.f32 %v426_v2, %v425_v4 }
 0x26d   : > { %v429_v7 = vadd.f32 %v428_v5, %v427_v6 }
 0x26f   : > { %430 = vst.msk [vmem:[%s318_s25] sm:$0x1] %vm396_vm8, %v429_v7 }
 0x270   : > { %742 = shalt.err (!%p739_p10)
}
 0x271   : > { %558 = dma.vmem_to_hbm [thread:$0]  (%p894_p0), %s443_s27, 16, %s445_s30, %s432_s28  }
 0x272 PF: > { %s1043_s14 = sld [smem:[#allocation14_spill]]  ;;  %s456_s16 = sand.u32 1, %s777_s21  }
 0x273   : > { %s457_s10 = scalar_lea.sflag [#allocation4], %s456_s16 }
 0x278   : > { %p1044_p11 = scmp.ge.s32.totalorder %s1043_s14, 2 }
 0x27a   : > { %p572_p5 = pnand %p1044_p11, %p902_p6 }
 0x27c   : > { %p573_p12 = pneg %p572_p5 }
 0x27e   : > { %772 = dma.done.wait (%p573_p12), %s457_s10, 16  }
 0x27f   : > { %774 = vsyncadd (%p573_p12), %s457_s10, 4294967280  ;;  %s1045_s24 = sld [smem:[#allocation15_spill]]  ;;  %s1048_s21 = smov %s781_s22 }
 0x280   : > { %s1046_s12 = sld [smem:[#allocation13_spill]] }
 0x281   : > { %s1047_s23 = sld [smem:[#allocation16_spill]] }
 0x285   : > { %p22_p2 = scmp.ge.s32.totalorder %s1045_s24, 4  }
 0x286   : > { %s1049_s22 = smov %s1046_s12 }
 0x287   :  { %24 = sbr.rel (!%p22_p2) target bundleno = 9 (0x9), region = 106 }
 0x28c   :  { %462 = vsyncpa [#allocation3], 1 }
 0x28d   :  { %464 = vsyncpa [#allocation3 + $0x1], 1 }
 0x28e   :  { %465 = vsyncpa [#allocation6], 1 }
 0x28f   :  { %467 = vsyncpa [#allocation6 + $0x1], 1 }
 0x290   :  { %468 = vsyncpa [#allocation4], 1 }
 0x291   :  { %470 = vsyncpa [#allocation4 + $0x1], 1 }

// kernel: tpu_custom_call.1
= control target key start
LH: loop header
LB: loop body
LE: loop exit
PB: predicated region body
PF: predicated region fallthrough
CT: control target
= control target key end

     0   :  { %s1020_s0 = inlined_call_operand.hbm [shape: f32[2,8,32], index: 0, kind: input, shape index: {}]   ;;  %s1021_s1 = inlined_call_operand.hbm [shape: f32[2,1,8], index: 1, kind: input, shape index: {}]   ;;  %s1022_s2 = inlined_call_operand.hbm [shape: f32[32,32], index: 2, kind: input, shape index: {}]   ;;  %s1023_s3 = inlined_call_operand.vmem [shape: f32[1,32], index: 3, kind: input, shape index: {}]   ;;  %s1024_s4 = inlined_call_operand.vmem [shape: f32[1,32], index: 4, kind: input, shape index: {}]   ;;  %s1025_s5 = inlined_call_operand.vmem [shape: f32[1,32], index: 5, kind: input, shape index: {}]   ;;  %s1026_s6 = inlined_call_operand.hbm [shape: f32[2,1,32], index: 6, kind: output, shape index: {}]  }
   0x1   :  { %1031 = sst [smem:[#allocation17_spill]] %s1022_s2 }
   0x2   :  { %11 = vsyncpa [#allocation3], 0 }
   0x3   :  { %13 = vsyncpa [#allocation3 + $0x1], 0 }
   0x4   :  { %14 = vsyncpa [#allocation6], 0 }
   0x5   :  { %16 = vsyncpa [#allocation6 + $0x1], 0 }
   0x6   :  { %17 = vsyncpa [#allocation4], 0 }
   0x7   :  { %19 = vsyncpa [#allocation4 + $0x1], 0  ;;  %s830_s21 = smov 0   ;;  %s832_s22 = smov 0  }
   0x8   :  { %s834_s23 = smov 0   ;;  %s836_s24 = smov 0  }
   0x9 LB: > { %1032 = sst [smem:[#allocation13_spill]] %s785_s23  ;;  %s854_s28 = sadd.s32 4294967295, %s789_s24   ;;  %s789_s24 = sphi %s836_s24, %s1045_s24   ;;  %s785_s23 = sphi %s834_s23, %s1047_s23   ;;  %s781_s22 = sphi %s832_s22, %s1049_s22   ;;  %s777_s21 = sphi %s830_s21, %s1048_s21  }
   0xa   : > { %1033 = sst [smem:[#allocation14_spill]] %s789_s24  ;;  %p539_p0 = scmp.ge.s32.totalorder %s789_s24, 1 }
   0xb   : > { %s1034_s2 = sld [smem:[#allocation17_spill]]  ;;  %p46_p1 = scmp.eq.s32.totalorder %s854_s28, 0 }
   0xc   : > { %p192_p2 = scmp.lt.s32.totalorder %s789_s24, 3  ;;  %s791_s30 = smov [#allocation7]  }
   0xd   : > { %s205_s7 = sshll.u32 %s791_s30, 4  ;;  %s792_s8 = smov 128   ;;  %s206_s7 = int_to_ptr.vmem [resolvable:$true] %s205_s7 }
   0xe   : > { %p859_p3 = pnand %p539_p0, %p192_p2  ;;  %s793_s9 = smov 8  }
   0xf   : > { %s538_s10 = sadd.s32 4294967294, %s789_s24   ;;  %s870_s11 = sadd.s32 1, %s789_s24  }
  0x10   : > { %p560_p4 = pneg %p859_p3  ;;  %1036 = sst [smem:[#allocation15_spill]] %s870_s11 }
  0x11   : > { %s203_s27 = sshll.u32 %s1034_s2, 4  ;;  %s32_s12 = sadd.s32 1, %s785_s23  ;;  %s204_s27 = int_to_ptr.hbm [resolvable:$true] %s203_s27 }
  0x12   : > { %p561_p6 = pnand %p560_p4, %p46_p1  ;;  %s29_s13 = ssub.s32 %s789_s24, %s870_s11 }
  0x13   : > { %p39_p7 = scmp.ne.s32.totalorder %s785_s23, %s781_s22  ;;  %p30_p8 = scmp.eq.s32.totalorder %s29_s13, 0 }
  0x14   : > { %563 = dma.hbm_to_vmem [thread:$0]  (!%p561_p6), %s204_s27, 512, %s206_s7, [#allocation6], %s792_s8, %s792_s8, %s793_s9  }
  0x15   : > { %p40_p9 = scmp.eq.s32.totalorder %s789_s24, 0  ;;  %p45_p10 = scmp.ne.s32.totalorder %s781_s22, %s777_s21 }
  0x16   : > { %p179_p11 = scmp.eq.s32.totalorder %s854_s28, 1  ;;  %p185_p2 = scmp.eq.s32.totalorder %s538_s10, 1 }
  0x17   : > { %s882_s14 = scalar_select %p30_p8, %s785_s23, %s32_s12  }
  0x18   : > { %p884_p12 = por %p40_p9, %p39_p7  ;;  %p890_p13 = por %p46_p1, %p45_p10 }
  0x19   : > { %1037 = sst [smem:[#allocation16_spill]] %s882_s14  ;;  %p894_p0 = por %p179_p11, %p39_p7 }
  0x1a   : > { %p576_p4 = scmp.lt.s32.totalorder %s789_s24, 2  ;;  %s900_s18 = sand.u32 1, %s785_s23  }
  0x1b   : > { %p902_p6 = por %p185_p2, %p45_p10  ;;  %s542_s20 = sshll.u32 %s900_s18, 3 }
  0x1c   : > { %s543_s25 = sshll.u32 %s789_s24, 3  ;;  %s232_s8 = scalar_lea.vmem [#allocation2], %s542_s20 }
  0x1d   : > { %s236_s30 = scalar_lea.hbm %s1020_s0, %s543_s25  ;;  %s240_s9 = sshll.u32 %s232_s8, 4  ;;  %s241_s9 = int_to_ptr.vmem [resolvable:$true] %s240_s9 }
  0x1e   : > { %s238_s7 = sshll.u32 %s236_s30, 4  ;;  %p913_p7 = pnand %p576_p4, %p884_p12  ;;  %s239_s7 = int_to_ptr.hbm [resolvable:$true] %s238_s7 }
  0x1f   : > { %s247_s12 = sand.u32 1, %s789_s24   ;;  %s253_s14 = scalar_lea.hbm %s1021_s1, %s789_s24 }
  0x20   : > { %s229_s23 = scalar_lea.sflag [#allocation3], %s900_s18  ;;  %s655_s26 = sshra.s32 %s239_s7, 4  ;;  %s656_s26 = int_to_ptr.hbm [resolvable:$true] %s655_s26 }
  0x21   : > { %s657_s25 = scalar_lea.hbm %s656_s26, 8  ;;  %p659_p9 = pneg %p913_p7 }
  0x22   : > { %p658_p8 = scmp.ne.s32.totalorder %s656_s26, %s657_s25  ;;  %s662_s27 = scalar_lea.hbm %s1020_s0, 16 }
  0x23   : > { %p663_p12 = scmp.lt.s32.totalorder %s656_s26, %s1020_s0  ;;  %p664_p2 = scmp.lt.s32.totalorder %s662_s27, %s657_s25 }
  0x24   : > { %p660_p10 = pnand %p659_p9, %p658_p8 }
  0x25   : > { %p665_p4 = por %p664_p2, %p663_p12 }
  0x26   : > { %p661_p11 = pneg %p660_p10 }
  0x28   : > { %p666_p5 = pnand %p665_p4, %p661_p11 }
  0x2a   : > { %669 = shalt.err (!%p666_p5)
}
  0x2b   : > { %567 = dma.hbm_to_vmem [thread:$0]  (!%p913_p7), %s239_s7, 128, %s241_s9, %s229_s23  }
  0x2c   : > { %s255_s2 = sshll.u32 %s253_s14, 4  ;;  %s250_s13 = scalar_lea.vmem [#allocation5], %s900_s18  ;;  %s256_s2 = int_to_ptr.hbm [resolvable:$true] %s255_s2 }
  0x2d   : > { %s257_s11 = sshll.u32 %s250_s13, 4  ;;  %s248_s15 = scalar_lea.sflag [#allocation6], %s247_s12  ;;  %s258_s11 = int_to_ptr.vmem [resolvable:$true] %s257_s11 }
  0x2e   : > { %s685_s20 = sshra.s32 %s256_s2, 4  ;;  %s692_s27 = scalar_lea.hbm %s1021_s1, 2  ;;  %s686_s20 = int_to_ptr.hbm [resolvable:$true] %s685_s20 }
  0x2f   : > { %s687_s24 = scalar_lea.hbm %s686_s20, 1  ;;  %p693_p5 = scmp.lt.s32.totalorder %s686_s20, %s1021_s1 }
  0x30   : > { %p688_p8 = scmp.ne.s32.totalorder %s686_s20, %s687_s24  ;;  %p694_p12 = scmp.lt.s32.totalorder %s692_s27, %s687_s24 }
  0x32   : > { %p690_p10 = pnand %p688_p8, %p659_p9  ;;  %p695_p2 = por %p694_p12, %p693_p5 }
  0x34   : > { %p691_p11 = pneg %p690_p10 }
  0x36   : > { %p696_p4 = pnand %p695_p2, %p691_p11 }
  0x38   : > { %699 = shalt.err (!%p696_p4)
}
  0x39   : > { %570 = dma.hbm_to_vmem [thread:$0]  (!%p913_p7), %s256_s2, 16, %s258_s11, %s248_s15  }
  0x3a   : > { %266 = sbr.rel (%p859_p3) target bundleno = 626 (0x272), region = 44  ;;  %s951_s14 = sand.u32 (!%p859_p3), 1, %s781_s22  }
  0x3b   : > { %s545_s18 = sshll.u32 (!%p859_p3), %s951_s14, 3  ;;  %s269_s7 = scalar_lea.sflag (!%p859_p3), [#allocation3], %s951_s14 }
  0x3c   : > { %s955_s9 = scalar_lea.vmem (!%p859_p3), [#allocation2], %s545_s18 }
  0x3f   : > { %760 = dma.done.wait (%p890_p13), %s269_s7, 128  }
  0x40   : > { %762 = vsyncadd (%p890_p13), %s269_s7, 4294967168  ;;  %s278_s24 = sand.u32 1, %s854_s28   ;;  %s281_s11 = scalar_lea.vmem [#allocation5], %s951_s14 }
  0x41   : > { %s279_s29 = scalar_lea.sflag [#allocation6], %s278_s24 }
  0x42   : > { %764 = dma.done.wait (%p890_p13), %s279_s29, 16  }
  0x43   : > { %766 = vsyncadd (%p890_p13), %s279_s29, 4294967280 }
  0x44   : > { %768 = dma.done.wait (%p46_p1), [#allocation6], 512  }
  0x45   : > { %770 = vsyncadd (%p46_p1), [#allocation6], 4294966784  ;;  %v322_v0 = vlaneseq  ;;  %vm337_vm0 = vcmask 57344   ;;  %v320_v2 = vld [vmem:[%s281_s11] sm:$0x1]  ;;  %v371_v5 = vld [vmem:[#allocation7 + $0x18] sm:$0xff]  ;;  %s440_s2 = scalar_lea.hbm %s1026_s6, %s854_s28 }
  0x46   : > { %v338_v3 = vsel %vm337_vm0, %v320_v2, 0.0  ;;  %v616_v4 = vld [vmem:[%s281_s11] ss:$0 sm:$0xff]  ;;  %v370_v6 = vld [vmem:[#allocation7 + $0x10] sm:$0xff]  ;;  %388 = vmatpush.msra.mxu0 %v371_v5  ;;  %v368_v8 = vld [vmem:[#allocation7] sm:$0xff]  ;;  %vm329_vm2 = vcmask 261120  }
  0x47   : > { %v323_v1 = vshrl.u32 %v322_v0, 7  ;;  %339 = vadd.xlane.f32.xlu0 %v338_v3  ;;  %v369_v7 = vld [vmem:[#allocation7 + $0x8] sm:$0xff]  ;;  %vm396_vm8 = vcmask 253952   ;;  %v794_v45 = vmov 32.0   ;;  %s318_s25 = scalar_lea.vmem [#allocation8], %s951_s14  ;;  %s444_s30 = sshll.u32 %s440_s2, 4  ;;  %s445_s30 = int_to_ptr.hbm [resolvable:$true] %s444_s30 }
  0x48   : > { %389 = vmatpush.msra.mxu0 %v370_v6  ;;  %v319_v16 = vld [vmem:[%s955_s9] sm:$0xff]  ;;  %s442_s27 = sshll.u32 %s318_s25, 4  ;;  %s432_s28 = scalar_lea.sflag [#allocation4], %s951_s14  ;;  %s443_s27 = int_to_ptr.vmem [resolvable:$true] %s442_s27 }
  0x49   : > { %615 = vset.pattern.permute.xlu0 %v323_v1  ;;  %v372_v41 = vld [vmem:[%s1023_s3] sm:$0x1]  ;;  %s729_s23 = sshra.s32 %s445_s30, 4  ;;  %s735_s24 = scalar_lea.hbm %s1026_s6, 2  ;;  %s730_s23 = int_to_ptr.hbm [resolvable:$true] %s729_s23 }
  0x4a   : > { %390 = vmatpush.msra.mxu0 %v369_v7  ;;  %v426_v2 = vld [vmem:[%s1024_s4] sm:$0x1]  ;;  %s731_s18 = scalar_lea.hbm %s730_s23, 1  ;;  %p736_p7 = scmp.lt.s32.totalorder %s730_s23, %s1026_s6 }
  0x4b   : > { %v428_v5 = vld [vmem:[%s1025_s5] sm:$0x1]  ;;  %p732_p1 = scmp.ne.s32.totalorder %s730_s23, %s731_s18  ;;  %p737_p9 = scmp.lt.s32.totalorder %s735_s24, %s731_s18 }
  0x4c   : > { %391 = vmatpush.msra.mxu0 %v368_v8 }
  0x4d   : > { %p733_p3 = pnand %p732_p1, %p894_p0  ;;  %p738_p8 = por %p737_p9, %p736_p7 }
  0x4f   : > { %p734_p13 = pneg %p733_p3 }
  0x51   : > { %p739_p10 = pnand %p738_p8, %p734_p13 }
  0x5b   : > { %326 = vperm.xlu0 %615, %v616_v4  }
  0xba   : > { %v340_v9 = vpop.xlane.xlu0 %339 }
  0xbb   : > { %617 = vrsqrt.f32 %v340_v9  ;;  %vm348_vm1 = vcmp.eq.f32.partialorder %v340_v9, inf  ;;  %v351_v18 = vand.u32 2147483648, %v340_v9  ;;  %vm350_vm3 = vcmp.eq.f32.partialorder %v340_v9, 0.0 }
  0xc1   : > { %v618_v10 = vpop.eup %617 }
  0xc2   : > { %v342_v11 = vmul.f32 %v618_v10, %v340_v9 }
  0xc4   : > { %v343_v12 = vmul.f32 %v618_v10, %v342_v11 }
  0xc6   : > { %v344_v13 = vmul.f32 0.5, %v343_v12 }
  0xc8   : > { %v345_v14 = vsub.f32 1.5, %v344_v13 }
  0xca   : > { %v346_v15 = vmul.f32 %v618_v10, %v345_v14 }
  0xcc   : > { %v347_v17 = vmul.f32 %v346_v15, %v340_v9 }
  0xcd   : > { %v327_v19 = vpop.permute.xlu0 %326 }
  0xce   : > { %v349_v20 = vsel %vm348_vm1, %v340_v9, %v347_v17  ;;  %v328_v21 = vmul.f32 %v327_v19, %v319_v16 }
  0xcf   : > { %v352_v22 = vsel %vm350_vm3, %v351_v18, %v349_v20 }
  0xd0   : > { %v330_v23 = vsel %vm329_vm2, %v328_v21, 0.0  ;;  %619 = vrcp.f32 %v352_v22  ;;  %v364_v31 = vand.u32 2147483648, %v352_v22  ;;  %v362_v34 = vand.u32 2147483647, %v352_v22 }
  0xd1   : > { %v331_v24 = vrot.slane %v330_v23, 4  ;;  %vm358_vm5 = vweird.f32 %v352_v22  ;;  %621 = vrcp.f32 %v794_v45 }
  0xd2   : > { %v365_v36 = vor.u32 1.1754944e-38, %v364_v31  ;;  %vm363_vm7 = vcmp.eq.f32.partialorder %v362_v34, 8.507059e+37 }
  0xd3   : > { %v332_v25 = vadd.f32 %v331_v24, %v330_v23 }
  0xd5   : > { %v333_v26 = vrot.slane %v332_v25, 2 }
  0xd6   : > { %v620_v27 = vpop.eup %619 }
  0xd7   : > { %v334_v28 = vadd.f32 %v333_v26, %v332_v25  ;;  %v354_v29 = vmul.f32 %v620_v27, %v352_v22  ;;  %vm359_vm4 = vweird.f32 %v620_v27  ;;  %v622_v46 = vpop.eup %621 }
  0xd8   : > { %vm360_vm6 = vmor %vm358_vm5, %vm359_vm4  ;;  %v401_v47 = vmul.f32 32.0, %v622_v46  ;;  %vm405_vm9 = vweird.f32 %v622_v46 }
  0xd9   : > { %v355_v30 = vsub.f32 1.0, %v354_v29  ;;  %v335_v32 = vrot.slane %v334_v28, 1 }
  0xda   : > { %v402_v48 = vsub.f32 1.0, %v401_v47 }
  0xdb   : > { %v356_v33 = vmul.f32 %v620_v27, %v355_v30  ;;  %v336_v37 = vadd.f32 %v335_v32, %v334_v28 }
  0xdc   : > { %v403_v49 = vmul.f32 %v622_v46, %v402_v48 }
  0xdd   : > { %v357_v35 = vadd.f32 %v620_v27, %v356_v33 }
  0xde   : > { %v404_v50 = vadd.f32 %v622_v46, %v403_v49 }
  0xdf   : > { %v361_v38 = vsel %vm360_vm6, %v620_v27, %v357_v35 }
  0xe0   : > { %v366_v39 = vsel %vm363_vm7, %v365_v36, %v361_v38  ;;  %v406_v51 = vsel %vm405_vm9, %v622_v46, %v404_v50 }
  0xe1   : > { %v367_v40 = vmul.f32 %v366_v39, %v336_v37 }
  0xe3   : > { %547 = vmatmul.msk.f32.vlgmr.msra.gmra.mxu0 %vm329_vm2, %v367_v40 }
 0x160   : > { %v393_v42 = vpop.f32.mrf.mxu0 }
 0x161   : > { %v394_v43 = vadd.f32 %v393_v42, %v372_v41 }
 0x163   : > { %v397_v44 = vsel %vm396_vm8, %v394_v43, 0.0 }
 0x164   : > { %398 = vadd.xlane.f32.xlu1 %v397_v44 }
 0x1d7   : > { %v399_v52 = vpop.xlane.xlu1 %398 }
 0x1d8   : > { %v407_v53 = vmul.f32 %v406_v51, %v399_v52 }
 0x1da   : > { %v408_v54 = vsub.f32 %v394_v43, %v407_v53 }
 0x1dc   : > { %v409_v55 = vmul.f32 %v408_v54, %v408_v54 }
 0x1de   : > { %v410_v56 = vsel %vm396_vm8, %v409_v55, 0.0 }
 0x1df   : > { %411 = vadd.xlane.f32.xlu1 %v410_v56 }
 0x252   : > { %v412_v57 = vpop.xlane.xlu1 %411 }
 0x253   : > { %v413_v58 = vmul.f32 %v412_v57, %v406_v51 }
 0x255   : > { %v414_v59 = vadd.f32 1e-12, %v413_v58 }
 0x257   : > { %623 = vrsqrt.f32 %v414_v59  ;;  %vm421_vm11 = vweird.f32 %v414_v59 }
 0x25d   : > { %v624_v60 = vpop.eup %623 }
 0x25e   : > { %v416_v61 = vmul.f32 %v624_v60, %v414_v59  ;;  %vm422_vm10 = vweird.f32 %v624_v60 }
 0x25f   : > { %vm423_vm12 = vmor %vm421_vm11, %vm422_vm10 }
 0x260   : > { %v417_v62 = vmul.f32 %v624_v60, %v416_v61 }
 0x262   : > { %v418_v63 = vmul.f32 0.5, %v417_v62 }
 0x264   : > { %v419_v0 = vsub.f32 1.5, %v418_v63 }
 0x266   : > { %v420_v1 = vmul.f32 %v624_v60, %v419_v0 }
 0x268   : > { %v424_v3 = vsel %vm423_vm12, %v624_v60, %v420_v1 }
 0x269   : > { %v425_v4 = vmul.f32 %v424_v3, %v408_v54 }
 0x26b   : > { %v427_v6 = vmul.f32 %v426_v2, %v425_v4 }
 0x26d   : > { %v429_v7 = vadd.f32 %v428_v5, %v427_v6 }
 0x26f   : > { %430 = vst.msk [vmem:[%s318_s25] sm:$0x1] %vm396_vm8, %v429_v7 }
 0x270   : > { %742 = shalt.err (!%p739_p10)
}
 0x271   : > { %558 = dma.vmem_to_hbm [thread:$0]  (%p894_p0), %s443_s27, 16, %s445_s30, %s432_s28  }
 0x272 PF: > { %s1043_s14 = sld [smem:[#allocation14_spill]]  ;;  %s456_s16 = sand.u32 1, %s777_s21  }
 0x273   : > { %s457_s10 = scalar_lea.sflag [#allocation4], %s456_s16 }
 0x278   : > { %p1044_p11 = scmp.ge.s32.totalorder %s1043_s14, 2 }
 0x27a   : > { %p572_p5 = pnand %p1044_p11, %p902_p6 }
 0x27c   : > { %p573_p12 = pneg %p572_p5 }
 0x27e   : > { %772 = dma.done.wait (%p573_p12), %s457_s10, 16  }
 0x27f   : > { %774 = vsyncadd (%p573_p12), %s457_s10, 4294967280  ;;  %s1045_s24 = sld [smem:[#allocation15_spill]]  ;;  %s1048_s21 = smov %s781_s22 }
 0x280   : > { %s1046_s12 = sld [smem:[#allocation13_spill]] }
 0x281   : > { %s1047_s23 = sld [smem:[#allocation16_spill]] }
 0x285   : > { %p22_p2 = scmp.ge.s32.totalorder %s1045_s24, 4  }
 0x286   : > { %s1049_s22 = smov %s1046_s12 }
 0x287   :  { %24 = sbr.rel (!%p22_p2) target bundleno = 9 (0x9), region = 106 }
 0x28c   :  { %462 = vsyncpa [#allocation3], 1 }
 0x28d   :  { %464 = vsyncpa [#allocation3 + $0x1], 1 }
 0x28e   :  { %465 = vsyncpa [#allocation6], 1 }
 0x28f   :  { %467 = vsyncpa [#allocation6 + $0x1], 1 }
 0x290   :  { %468 = vsyncpa [#allocation4], 1 }
 0x291   :  { %470 = vsyncpa [#allocation4 + $0x1], 1 }

</bundles_post_ra>
